<compile_context>
chip_gen: v7x
topology: tpu7x:2x2x1
jax: 0.10.0
libtpu: 0.0.40
codegen_flags: <defaults>
</compile_context>

<pallas_src>
import functools

import jax
import jax.numpy as jnp
from jax.experimental import pallas as pl
from jax.experimental.pallas import tpu as pltpu


def _round_up(a, b):
    return (a + b - 1) // b * b


def _divisors(n):
    return [d for d in range(1, n + 1) if n % d == 0]


def _tpu_params():
    """Best-effort (vmem_capacity_bytes, tensorcores_per_chip) with safe defaults."""
    vmem = 128 * 2**20
    cores = 1
    try:
        info = pltpu.get_tpu_info()
        for name in ("vmem_capacity_bytes", "vmem_bytes", "vmem_size_bytes"):
            v = getattr(info, name, None)
            if v:
                vmem = int(v)
                break
        for name in ("num_cores", "tensorcore_count", "core_count"):
            v = getattr(info, name, None)
            if v:
                cores = int(v)
                break
    except Exception:
        pass
    try:
        dev = jax.devices()[0]
        kind = str(getattr(dev, "device_kind", "")).lower()
        if cores == 1:
            cores = int(getattr(dev, "num_cores", 1) or 1)
        if "v7" in kind:
            cores = max(cores, 2)
    except Exception:
        pass
    if vmem <= 64 * 2**20:   # v7x-class: 64 MiB VMEM, 2 TCs share HBM bandwidth
        cores = max(cores, 2)
    return vmem, cores


def _choose_fold(gc, hw):
    """Fold factor k: slab (gc, HW) -> (gc*k, HW/k).  Keeps HW/k a multiple of
    128 (lane-dense, unmasked stores) and prefers the smallest k that lifts the
    sublane dim to >= 8 (no sublane padding waste)."""
    cands = [k for k in range(1, hw + 1) if hw % k == 0 and (hw // k) % 128 == 0]
    if not cands:
        return 1
    good = [k for k in cands if gc * k >= 8]
    return min(good) if good else max(cands)


def _pick_block(total, cap, prefer_even_grid):
    """Largest divisor of `total` that is <= cap; on multi-TC chips prefer a
    divisor giving an even (else >= 2) grid so both TensorCores get work."""
    cands = [d for d in _divisors(total) if d <= max(1, cap)]
    if prefer_even_grid:
        even = [d for d in cands if (total // d) % 2 == 0]
        if even:
            return even[-1]
        multi = [d for d in cands if (total // d) >= 2]
        if multi:
            return multi[-1]
    return cands[-1]


def _gbn_kernel(x_ref, w_ref, b_ref, o_ref, *, inv_n, inv_nm1, eps):
    # x_ref block: (a, b, rows, hwk); each (rows, hwk) plane is one full group
    # slab, so the reductions below are complete (no partial-stats accumulator).
    x = x_ref[...].astype(jnp.float32)

    # Mean: reduce lanes first, then sublanes.
    mean = jnp.sum(jnp.sum(x, axis=3, keepdims=True), axis=2, keepdims=True) * inv_n

    # Unbiased (ddof=1) variance; (x - mean) is only used inside this reduction.
    d = x - mean
    var = jnp.sum(jnp.sum(d * d, axis=3, keepdims=True), axis=2, keepdims=True) * inv_nm1

    inv_std = 1.0 / (jnp.sqrt(var) + eps)          # (a, b, 1, 1); eps on std, exact recip

    # Fused per-channel affine built from tiny (.., rows, 1) operands.
    scale = w_ref[...] * inv_std                    # (a|1, b, rows, 1)
    shift = b_ref[...] - mean * scale               # (a,   b, rows, 1)
    o_ref[...] = (x * scale + shift).astype(o_ref.dtype)


def group_batchnorm2d_pallas(x, weight, bias, *, group_num, eps=1e-10):
    """x: (N, C, H, W) f32/bf16; weight/bias: (C,) or (C,1,1).  Returns x.dtype."""
    N, C, H, W = x.shape
    assert C >= group_num and C % group_num == 0
    gc = C // group_num
    HW = H * W
    NG = N * group_num
    n_elem = gc * HW
    assert n_elem > 1, "need more than one element per group for unbiased std"

    io_dtype = x.dtype
    itemsize = x.dtype.itemsize
    sub_io = 8 * max(1, 4 // itemsize)              # sublane packing of the I/O dtype

    # ---- fold a factor of HW into the channel axis (lane-dense, no sublane pad) ----
    k = _choose_fold(gc, HW)
    rows = gc * k
    hwk = HW // k

    # Per-row affine params (each channel's value repeated k times), in f32.
    w_rows = jnp.repeat(weight.reshape(group_num, gc).astype(jnp.float32), k, axis=1)
    b_rows = jnp.repeat(bias.reshape(group_num, gc).astype(jnp.float32), k, axis=1)

    # ---- per-generation block sizing ----
    vmem_cap, cores = _tpu_params()
    multi_core = cores >= 2

    lanes = _round_up(hwk, 128)
    rows_io = _round_up(rows, sub_io)
    rows_f32 = _round_up(rows, 8)
    slab_io = rows_io * lanes * itemsize            # one padded slab, I/O dtype
    slab_f32 = rows_f32 * lanes * 4                 # one padded slab, f32 temporary
    small_f32 = rows_f32 * 128 * 4                  # lane-1 per-slab temporaries
    # 2 in + 2 out buffers, ~3 full f32 temporaries, ~10 small temporaries.
    per_slab = 4 * slab_io + 3 * slab_f32 + 10 * small_f32
    fixed = 4 * group_num * rows_f32 * 128 * 4 + 2 * 2**20   # w/b buffers + misc

    vmem_budget = max(8 * 2**20, vmem_cap - 16 * 2**20)       # headroom on every chip
    target_real = 4 * 2**20 if vmem_cap >= 96 * 2**20 else 3 * 2**20
    real_slab = rows * hwk * itemsize

    n_vmem = max(1, (vmem_budget - fixed) // per_slab)
    n_target = max(1, target_real // real_slab)
    n_cap = max(1, min(NG, n_vmem, n_target))                 # slabs per grid step

    if group_num <= n_cap:
        # Blocks cover whole images -> weight/bias are grid-invariant blocks
        # (constant index_map: DMA'd once, VMEM cost independent of block size).
        a_total, b_dim = N, group_num
        a_blk = _pick_block(N, n_cap // group_num, multi_core)
        x4 = x.reshape(a_total, b_dim, rows, hwk)
        w4 = w_rows.reshape(1, group_num, rows, 1)
        b4 = b_rows.reshape(1, group_num, rows, 1)
        wb_spec = pl.BlockSpec((1, group_num, rows, 1), lambda i: (0, 0, 0, 0))
    else:
        # Fewer than group_num slabs fit per step: fall back to per-block
        # (a_blk, 1, rows, 1) weight/bias tiles.
        # TODO(synk): if even a single slab overflows the VMEM budget (huge H*W),
        # a second grid axis over HW with pl.when init/finalize partial-stats
        # scratch would be needed; not implemented here.
        a_total, b_dim = NG, 1
        a_blk = _pick_block(NG, n_cap, multi_core)
        x4 = x.reshape(a_total, 1, rows, hwk)
        w4 = jnp.broadcast_to(w_rows[None], (N, group_num, rows)).reshape(NG, 1, rows, 1)
        b4 = jnp.broadcast_to(b_rows[None], (N, group_num, rows)).reshape(NG, 1, rows, 1)
        wb_spec = pl.BlockSpec((a_blk, 1, rows, 1), lambda i: (i, 0, 0, 0))

    grid = a_total // a_blk
    slabs_per_block = a_blk * b_dim
    vmem_limit = int(min(vmem_cap - 8 * 2**20,
                         max(16 * 2**20,
                             fixed + slabs_per_block * per_slab + 8 * 2**20)))

    kernel = functools.partial(
        _gbn_kernel,
        inv_n=float(1.0 / n_elem),
        inv_nm1=float(1.0 / (n_elem - 1)),
        eps=float(eps),
    )

    out4 = pl.pallas_call(
        kernel,
        out_shape=jax.ShapeDtypeStruct((a_total, b_dim, rows, hwk), io_dtype),
        grid_spec=pltpu.PrefetchScalarGridSpec(
            num_scalar_prefetch=0,
            grid=(grid,),
            in_specs=[
                pl.BlockSpec((a_blk, b_dim, rows, hwk), lambda i: (i, 0, 0, 0)),
                wb_spec,
                wb_spec,
            ],
            out_specs=pl.BlockSpec((a_blk, b_dim, rows, hwk), lambda i: (i, 0, 0, 0)),
        ),
        compiler_params=pltpu.CompilerParams(
            # "parallel" lets Mosaic shard the block axis across TensorCores on
            # multi-TC parts; single-TC chips just run the sequential loop.
            dimension_semantics=("parallel",),
            vmem_limit_bytes=vmem_limit,
        ),
    )(x4, w4, b4)

    return out4.reshape(N, C, H, W)


def group_batchnorm2d_reference(x, weight, bias, *, group_num, eps=1e-10):
    """Pure-JAX reference matching the PyTorch module (unbiased std)."""
    N, C, H, W = x.shape
    xg = x.astype(jnp.float32).reshape(N, group_num, -1)
    mean = jnp.mean(xg, axis=2, keepdims=True)
    var = jnp.sum((xg - mean) ** 2, axis=2, keepdims=True) / (xg.shape[2] - 1)
    std = jnp.sqrt(var)
    xn = ((xg - mean) / (std + eps)).reshape(N, C, H, W)
    out = xn * weight.reshape(-1)[None, :, None, None] + bias.reshape(-1)[None, :, None, None]
    return out.astype(x.dtype)


if __name__ == "__main__":
    # Small shapes consistent with the module (c_num >= group_num).
    B, C, H, W = 2, 4, 16, 16
    group_num = 2
    eps = 1e-10

    key = jax.random.PRNGKey(0)
    kx, kw, kb = jax.random.split(key, 3)

    x = jax.random.normal(kx, (B, C, H, W), dtype=jnp.float32)
    weight = jax.random.normal(kw, (C,), dtype=jnp.float32)   # module: randn(C,1,1)
    bias = jax.random.normal(kb, (C,), dtype=jnp.float32) * 0.1

    run = jax.jit(functools.partial(group_batchnorm2d_pallas,
                                    group_num=group_num, eps=eps))
    out = jax.block_until_ready(run(x, weight, bias))

    ref = group_batchnorm2d_reference(x, weight, bias,
                                      group_num=group_num, eps=eps)
    assert out.shape == (B, C, H, W)
    assert out.dtype == x.dtype
    assert jnp.allclose(out, ref, atol=2e-5, rtol=2e-5), "mismatch vs reference"

    print("KERNEL_OK")
</pallas_src>

<mosaic_0001>
module attributes {stable_mosaic.version = 11 : i64} {
  func.func @_gbn_kernel(%arg0: i32, %arg1: memref<2x2x4x128xf32, #tpu.memory_space<vmem>>, %arg2: memref<1x2x4x1xf32, #tpu.memory_space<vmem>>, %arg3: memref<1x2x4x1xf32, #tpu.memory_space<vmem>>, %arg4: memref<2x2x4x128xf32, #tpu.memory_space<vmem>>) attributes {dimension_semantics = [#tpu.dimension_semantics<parallel>], iteration_bounds = array<i64: 1>, scalar_prefetch = 0 : i64, scratch_operands = 0 : i64, tpu.core_type = #tpu.core_type<tc>, window_params = [{transform_indices = @transform_0, window_bounds = array<i64: 2, 2, 4, 128>}, {pipeline_mode = #tpu.pipeline_mode<synchronous>, transform_indices = @transform_1, window_bounds = array<i64: 1, 2, 4, 1>}, {pipeline_mode = #tpu.pipeline_mode<synchronous>, transform_indices = @transform_2, window_bounds = array<i64: 1, 2, 4, 1>}, {transform_indices = @transform_3, window_bounds = array<i64: 2, 2, 4, 128>}]} {
    %c0 = arith.constant 0 : index
    %c0_0 = arith.constant 0 : index
    %c0_1 = arith.constant 0 : index
    %c0_2 = arith.constant 0 : index
    %0 = vector.load %arg1[%c0, %c0_0, %c0_1, %c0_2] : memref<2x2x4x128xf32, #tpu.memory_space<vmem>>, vector<2x2x4x128xf32>
    %cst = arith.constant dense<0.000000e+00> : vector<2x2x4xf32>
    %1 = vector.multi_reduction <add>, %0, %cst [3] : vector<2x2x4x128xf32> to vector<2x2x4xf32>
    %2 = vector.shape_cast %1 : vector<2x2x4xf32> to vector<2x2x4x1xf32>
    %cst_3 = arith.constant dense<0.000000e+00> : vector<2x2x1xf32>
    %3 = vector.multi_reduction <add>, %2, %cst_3 [2] : vector<2x2x4x1xf32> to vector<2x2x1xf32>
    %4 = vector.shape_cast %3 : vector<2x2x1xf32> to vector<2x2x1x1xf32>
    %cst_4 = arith.constant 0.001953125 : f32
    %5 = vector.broadcast %cst_4 : f32 to vector<2x2x1x1xf32>
    %6 = arith.mulf %4, %5 : vector<2x2x1x1xf32>
    %7 = vector.broadcast %6 : vector<2x2x1x1xf32> to vector<2x2x4x128xf32>
    %8 = arith.subf %0, %7 : vector<2x2x4x128xf32>
    %9 = arith.mulf %8, %8 : vector<2x2x4x128xf32>
    %cst_5 = arith.constant dense<0.000000e+00> : vector<2x2x4xf32>
    %10 = vector.multi_reduction <add>, %9, %cst_5 [3] : vector<2x2x4x128xf32> to vector<2x2x4xf32>
    %11 = vector.shape_cast %10 : vector<2x2x4xf32> to vector<2x2x4x1xf32>
    %cst_6 = arith.constant dense<0.000000e+00> : vector<2x2x1xf32>
    %12 = vector.multi_reduction <add>, %11, %cst_6 [2] : vector<2x2x4x1xf32> to vector<2x2x1xf32>
    %13 = vector.shape_cast %12 : vector<2x2x1xf32> to vector<2x2x1x1xf32>
    %cst_7 = arith.constant 0.00195694715 : f32
    %14 = vector.broadcast %cst_7 : f32 to vector<2x2x1x1xf32>
    %15 = arith.mulf %13, %14 : vector<2x2x1x1xf32>
    %16 = math.sqrt %15 : vector<2x2x1x1xf32>
    %cst_8 = arith.constant 1.000000e-10 : f32
    %17 = vector.broadcast %cst_8 : f32 to vector<2x2x1x1xf32>
    %18 = arith.addf %16, %17 : vector<2x2x1x1xf32>
    %cst_9 = arith.constant 1.000000e+00 : f32
    %19 = vector.broadcast %cst_9 : f32 to vector<2x2x1x1xf32>
    %20 = arith.divf %19, %18 : vector<2x2x1x1xf32>
    %c0_10 = arith.constant 0 : index
    %c0_11 = arith.constant 0 : index
    %c0_12 = arith.constant 0 : index
    %c0_13 = arith.constant 0 : index
    %21 = vector.load %arg2[%c0_10, %c0_11, %c0_12, %c0_13] : memref<1x2x4x1xf32, #tpu.memory_space<vmem>>, vector<1x2x4x1xf32>
    %22 = vector.broadcast %21 : vector<1x2x4x1xf32> to vector<2x2x4x1xf32>
    %23 = vector.broadcast %20 : vector<2x2x1x1xf32> to vector<2x2x4x1xf32>
    %24 = arith.mulf %22, %23 : vector<2x2x4x1xf32>
    %c0_14 = arith.constant 0 : index
    %c0_15 = arith.constant 0 : index
    %c0_16 = arith.constant 0 : index
    %c0_17 = arith.constant 0 : index
    %25 = vector.load %arg3[%c0_14, %c0_15, %c0_16, %c0_17] : memref<1x2x4x1xf32, #tpu.memory_space<vmem>>, vector<1x2x4x1xf32>
    %26 = vector.broadcast %6 : vector<2x2x1x1xf32> to vector<2x2x4x1xf32>
    %27 = arith.mulf %26, %24 : vector<2x2x4x1xf32>
    %28 = vector.broadcast %25 : vector<1x2x4x1xf32> to vector<2x2x4x1xf32>
    %29 = arith.subf %28, %27 : vector<2x2x4x1xf32>
    %30 = vector.broadcast %24 : vector<2x2x4x1xf32> to vector<2x2x4x128xf32>
    %31 = arith.mulf %0, %30 : vector<2x2x4x128xf32>
    %32 = vector.broadcast %29 : vector<2x2x4x1xf32> to vector<2x2x4x128xf32>
    %33 = arith.addf %31, %32 : vector<2x2x4x128xf32>
    %c0_18 = arith.constant 0 : index
    %c0_19 = arith.constant 0 : index
    %c0_20 = arith.constant 0 : index
    %c0_21 = arith.constant 0 : index
    %34 = vector.load %arg4[%c0_18, %c0_19, %c0_20, %c0_21] : memref<2x2x4x128xf32, #tpu.memory_space<vmem>>, vector<2x2x4x128xf32>
    tpu.vector_store %arg4[%c0_18, %c0_19, %c0_20, %c0_21], %33 {strides = array<i32>} : memref<2x2x4x128xf32, #tpu.memory_space<vmem>>, vector<2x2x4x128xf32>,
    return
  }
  func.func @transform_0(%arg0: i32) -> (i32, i32, i32, i32) {
    %c0_i32 = arith.constant 0 : i32
    %c0_i32_0 = arith.constant 0 : i32
    %c0_i32_1 = arith.constant 0 : i32
    %c0_i32_2 = arith.constant 0 : i32
    return %arg0, %c0_i32, %c0_i32_0, %c0_i32_1 : i32, i32, i32, i32
  }
  func.func @transform_1(%arg0: i32) -> (i32, i32, i32, i32) {
    %c0_i32 = arith.constant 0 : i32
    %c0_i32_0 = arith.constant 0 : i32
    %c0_i32_1 = arith.constant 0 : i32
    %c0_i32_2 = arith.constant 0 : i32
    %c0_i32_3 = arith.constant 0 : i32
    return %c0_i32, %c0_i32_0, %c0_i32_1, %c0_i32_2 : i32, i32, i32, i32
  }
  func.func @transform_2(%arg0: i32) -> (i32, i32, i32, i32) {
    %c0_i32 = arith.constant 0 : i32
    %c0_i32_0 = arith.constant 0 : i32
    %c0_i32_1 = arith.constant 0 : i32
    %c0_i32_2 = arith.constant 0 : i32
    %c0_i32_3 = arith.constant 0 : i32
    return %c0_i32, %c0_i32_0, %c0_i32_1, %c0_i32_2 : i32, i32, i32, i32
  }
  func.func @transform_3(%arg0: i32) -> (i32, i32, i32, i32) {
    %c0_i32 = arith.constant 0 : i32
    %c0_i32_0 = arith.constant 0 : i32
    %c0_i32_1 = arith.constant 0 : i32
    %c0_i32_2 = arith.constant 0 : i32
    return %arg0, %c0_i32, %c0_i32_0, %c0_i32_1 : i32, i32, i32, i32
  }
}

</mosaic_0001>

<bundles_post_ra>
// kernel: group_batchnorm2d_pallas.1
= control target key start
LH: loop header
LB: loop body
LE: loop exit
PB: predicated region body
PF: predicated region fallthrough
CT: control target
= control target key end

     0   :  { %vm18_vm0 = vcmask 1043456   ;;  %v246_v56 = vmov 0   ;;  %s355_s0 = inlined_call_operand.vmem [shape: f32[2,2,4,128], index: 0, kind: input, shape index: {}]   ;;  %s356_s1 = inlined_call_operand.vmem [shape: f32[1,2,4,1], index: 1, kind: input, shape index: {}]   ;;  %s357_s2 = inlined_call_operand.vmem [shape: f32[1,2,4,1], index: 2, kind: input, shape index: {}]   ;;  %s358_s3 = inlined_call_operand.vmem [shape: f32[2,2,4,128], index: 3, kind: output, shape index: {}]  }
   0x1   :  { %v270_v0 = vld [vmem:[%s355_s0] sm:$0xf]  ;;  %v275_v1 = vld [vmem:[%s355_s0 + $0x8] sm:$0xf]  ;;  %v280_v2 = vld [vmem:[%s355_s0 + $0x4] sm:$0xf]  ;;  %228 = vset.pattern.permute.xlu0 %v246_v56  ;;  %229 = vset.pattern.permute.xlu1 %v246_v56 }
   0x2   :  { %v19_v3 = vsel %vm18_vm0, %v270_v0, 0.0  ;;  %v25_v4 = vsel %vm18_vm0, %v275_v1, 0.0  ;;  %v289_v5 = vld [vmem:[%s355_s0 + $0xc] sm:$0xf]  ;;  %v22_v6 = vsel %vm18_vm0, %v280_v2, 0.0 }
   0x3   :  { %20 = vadd.xlane.f32.xlu0 %v19_v3  ;;  %26 = vadd.xlane.f32.xlu1 %v25_v4  ;;  %v28_v7 = vsel %vm18_vm0, %v289_v5, 0.0 }
   0x7   :  { %23 = vadd.xlane.f32.xlu0 %v22_v6  ;;  %29 = vadd.xlane.f32.xlu1 %v28_v7 }
  0x90   :  { %v21_v8 = vpop.xlane.xlu0 %20  ;;  %v27_v9 = vpop.xlane.xlu1 %26 }
  0x91   :  { %v31_v10 = vsel %vm18_vm0, %v21_v8, 0.0  ;;  %v45_v11 = vsel %vm18_vm0, %v27_v9, 0.0 }
  0x92   :  { %v32_v12 = vrot.slane %v31_v10, 4  ;;  %v46_v13 = vrot.slane %v45_v11, 4 }
  0x94   :  { %v33_v14 = vadd.f32 %v32_v12, %v31_v10  ;;  %v47_v15 = vadd.f32 %v46_v13, %v45_v11  ;;  %v24_v16 = vpop.xlane.xlu0 %23  ;;  %v30_v17 = vpop.xlane.xlu1 %29 }
  0x95   :  { %v38_v18 = vsel %vm18_vm0, %v24_v16, 0.0  ;;  %v52_v19 = vsel %vm18_vm0, %v30_v17, 0.0 }
  0x96   :  { %v34_v20 = vrot.slane %v33_v14, 2  ;;  %v48_v21 = vrot.slane %v47_v15, 2  ;;  %v39_v22 = vrot.slane %v38_v18, 4  ;;  %v53_v23 = vrot.slane %v52_v19, 4 }
  0x98   :  { %v35_v24 = vadd.f32 %v34_v20, %v33_v14  ;;  %v49_v25 = vadd.f32 %v48_v21, %v47_v15  ;;  %v40_v26 = vadd.f32 %v39_v22, %v38_v18  ;;  %v54_v27 = vadd.f32 %v53_v23, %v52_v19 }
  0x9a   :  { %v36_v28 = vrot.slane %v35_v24, 1  ;;  %v50_v29 = vrot.slane %v49_v25, 1  ;;  %v41_v30 = vrot.slane %v40_v26, 2  ;;  %v55_v31 = vrot.slane %v54_v27, 2 }
  0x9c   :  { %v42_v32 = vadd.f32 %v41_v30, %v40_v26  ;;  %v56_v33 = vadd.f32 %v55_v31, %v54_v27  ;;  %v37_v34 = vadd.f32 %v36_v28, %v35_v24  ;;  %v51_v35 = vadd.f32 %v50_v29, %v49_v25 }
  0x9e   :  { %v43_v36 = vrot.slane %v42_v32, 1  ;;  %v57_v37 = vrot.slane %v56_v33, 1  ;;  %v299_v38 = vmul.f32 0.001953125, %v37_v34  ;;  %v301_v39 = vmul.f32 0.001953125, %v51_v35 }
  0xa0   :  { %v63_v40 = vsub.f32 %v270_v0, %v299_v38  ;;  %v65_v41 = vsub.f32 %v275_v1, %v301_v39  ;;  %v44_v42 = vadd.f32 %v43_v36, %v42_v32  ;;  %v58_v43 = vadd.f32 %v57_v37, %v56_v33 }
  0xa2   :  { %v67_v44 = vmul.f32 %v63_v40, %v63_v40  ;;  %v307_v45 = vmul.f32 0.001953125, %v44_v42  ;;  %v309_v46 = vmul.f32 0.001953125, %v58_v43  ;;  %v69_v48 = vmul.f32 %v65_v41, %v65_v41 }
  0xa4   :  { %v71_v47 = vsel %vm18_vm0, %v67_v44, 0.0  ;;  %v64_v49 = vsub.f32 %v280_v2, %v307_v45  ;;  %v66_v50 = vsub.f32 %v289_v5, %v309_v46  ;;  %v77_v52 = vsel %vm18_vm0, %v69_v48, 0.0 }
  0xa5   :  { %72 = vadd.xlane.f32.xlu0 %v71_v47 }
  0xa6   :  { %v68_v51 = vmul.f32 %v64_v49, %v64_v49  ;;  %v70_v54 = vmul.f32 %v66_v50, %v66_v50 }
  0xa8   :  { %v74_v53 = vsel %vm18_vm0, %v68_v51, 0.0  ;;  %v80_v55 = vsel %vm18_vm0, %v70_v54, 0.0 }
  0xa9   :  { %78 = vadd.xlane.f32.xlu0 %v77_v52  ;;  %75 = vadd.xlane.f32.xlu1 %v74_v53 }
  0xad   :  { %81 = vadd.xlane.f32.xlu1 %v80_v55 }
 0x132   :  { %v73_v57 = vpop.xlane.xlu0 %72 }
 0x133   :  { %v83_v58 = vsel %vm18_vm0, %v73_v57, 0.0 }
 0x134   :  { %v84_v59 = vrot.slane %v83_v58, 4 }
 0x136   :  { %v85_v60 = vadd.f32 %v84_v59, %v83_v58  ;;  %v76_v61 = vpop.xlane.xlu1 %75  ;;  %v79_v62 = vpop.xlane.xlu0 %78 }
 0x137   :  { %v90_v63 = vsel %vm18_vm0, %v76_v61, 0.0  ;;  %v97_v3 = vsel %vm18_vm0, %v79_v62, 0.0  ;;  %v155_v61 = vld [vmem:[%s356_s1] sm:$0xf] }
 0x138   :  { %v86_v4 = vrot.slane %v85_v60, 2  ;;  %v91_v6 = vrot.slane %v90_v63, 4  ;;  %v98_v7 = vrot.slane %v97_v3, 4 }
 0x13a   :  { %v87_v8 = vadd.f32 %v86_v4, %v85_v60  ;;  %v92_v9 = vadd.f32 %v91_v6, %v90_v63  ;;  %v99_v10 = vadd.f32 %v98_v7, %v97_v3  ;;  %v82_v11 = vpop.xlane.xlu1 %81  ;;  %v156_v3 = vld [vmem:[%s356_s1 + $0x4] sm:$0xf] }
 0x13b   :  { %v104_v12 = vsel %vm18_vm0, %v82_v11, 0.0 }
 0x13c   :  { %v88_v13 = vrot.slane %v87_v8, 1  ;;  %v93_v14 = vrot.slane %v92_v9, 2  ;;  %v100_v15 = vrot.slane %v99_v10, 2  ;;  %v105_v16 = vrot.slane %v104_v12, 4 }
 0x13e   :  { %v89_v17 = vadd.f32 %v88_v13, %v87_v8  ;;  %v94_v18 = vadd.f32 %v93_v14, %v92_v9  ;;  %v101_v19 = vadd.f32 %v100_v15, %v99_v10  ;;  %v106_v20 = vadd.f32 %v105_v16, %v104_v12  ;;  %v161_v12 = vld [vmem:[%s357_s2] sm:$0xf]  ;;  %v162_v15 = vld [vmem:[%s357_s2 + $0x4] sm:$0xf] }
 0x140   :  { %v111_v21 = vmul.f32 0.0019569471, %v89_v17  ;;  %v95_v22 = vrot.slane %v94_v18, 1  ;;  %v102_v23 = vrot.slane %v101_v19, 1  ;;  %v107_v24 = vrot.slane %v106_v20, 2 }
 0x142   :  { %230 = vrsqrt.f32 %v111_v21  ;;  %v96_v25 = vadd.f32 %v95_v22, %v94_v18  ;;  %v103_v26 = vadd.f32 %v102_v23, %v101_v19  ;;  %v108_v27 = vadd.f32 %v107_v24, %v106_v20 }
 0x143   :  { %vm117_vm1 = vcmp.eq.f32.partialorder %v111_v21, inf  ;;  %v120_v35 = vand.u32 2147483648, %v111_v21  ;;  %vm119_vm2 = vcmp.eq.f32.partialorder %v111_v21, 0.0 }
 0x144   :  { %v112_v28 = vmul.f32 0.0019569471, %v96_v25  ;;  %v113_v29 = vmul.f32 0.0019569471, %v103_v26  ;;  %v109_v30 = vrot.slane %v108_v27, 1 }
 0x146   :  { %232 = vrsqrt.f32 %v112_v28  ;;  %v110_v31 = vadd.f32 %v109_v30, %v108_v27  ;;  %vm124_vm3 = vcmp.eq.f32.partialorder %v112_v28, inf  ;;  %vm126_vm4 = vcmp.eq.f32.partialorder %v112_v28, 0.0 }
 0x147   :  { %234 = vrsqrt.f32 %v113_v29  ;;  %v127_v44 = vand.u32 2147483648, %v112_v28  ;;  %vm131_vm5 = vcmp.eq.f32.partialorder %v113_v29, inf  ;;  %v134_v49 = vand.u32 2147483648, %v113_v29 }
 0x148   :  { %v114_v32 = vmul.f32 0.0019569471, %v110_v31  ;;  %vm133_vm6 = vcmp.eq.f32.partialorder %v113_v29, 0.0 }
 0x14a   :  { %236 = vrsqrt.f32 %v114_v32  ;;  %vm138_vm7 = vcmp.eq.f32.partialorder %v114_v32, inf  ;;  %v141_v57 = vand.u32 2147483648, %v114_v32  ;;  %vm140_vm8 = vcmp.eq.f32.partialorder %v114_v32, 0.0 }
 0x14c   :  { %v231_v33 = vpop.eup %230 }
 0x14d   :  { %v116_v34 = vmul.f32 %v231_v33, %v111_v21 }
 0x14f   :  { %v118_v36 = vsel %vm117_vm1, %v111_v21, %v116_v34 }
 0x150   :  { %v233_v37 = vpop.eup %232  ;;  %v121_v40 = vsel %vm119_vm2, %v120_v35, %v118_v36 }
 0x151   :  { %v235_v41 = vpop.eup %234  ;;  %v143_v42 = vadd.f32 1e-10, %v121_v40  ;;  %v123_v43 = vmul.f32 %v233_v37, %v112_v28 }
 0x152   :  { %v130_v47 = vmul.f32 %v235_v41, %v113_v29 }
 0x153   :  { %238 = vrcp.f32 %v143_v42  ;;  %v125_v48 = vsel %vm124_vm3, %v112_v28, %v123_v43 }
 0x154   :  { %v237_v50 = vpop.eup %236  ;;  %v128_v51 = vsel %vm126_vm4, %v127_v44, %v125_v48  ;;  %v132_v52 = vsel %vm131_vm5, %v113_v29, %v130_v47 }
 0x155   :  { %v144_v53 = vadd.f32 1e-10, %v128_v51  ;;  %v135_v54 = vsel %vm133_vm6, %v134_v49, %v132_v52  ;;  %v137_v55 = vmul.f32 %v237_v50, %v114_v32 }
 0x156   :  { %v145_v56 = vadd.f32 1e-10, %v135_v54 }
 0x157   :  { %240 = vrcp.f32 %v144_v53  ;;  %v139_v58 = vsel %vm138_vm7, %v114_v32, %v137_v55 }
 0x158   :  { %v142_v59 = vsel %vm140_vm8, %v141_v57, %v139_v58  ;;  %242 = vrcp.f32 %v145_v56 }
 0x159   :  { %v146_v60 = vadd.f32 1e-10, %v142_v59 }
 0x15b   :  { %244 = vrcp.f32 %v146_v60 }
 0x15d   :  { %v239_v62 = vpop.eup %238 }
 0x15e   :  { %v157_v63 = vmul.f32 %v239_v62, %v155_v61 }
 0x160   :  { %173 = vperm.xlu0 %228, %v157_v63   ;;  %v163_v11 = vmul.f32 %v157_v63, %v299_v38 }
 0x161   :  { %v241_v4 = vpop.eup %240 }
 0x162   :  { %v158_v6 = vmul.f32 %v241_v4, %v156_v3  ;;  %v243_v7 = vpop.eup %242  ;;  %v167_v13 = vsub.f32 %v161_v12, %v163_v11 }
 0x163   :  { %v159_v8 = vmul.f32 %v243_v7, %v155_v61 }
 0x164   :  { %178 = vperm.xlu1 %229, %v158_v6   ;;  %v164_v14 = vmul.f32 %v158_v6, %v307_v45 }
 0x165   :  { %v245_v9 = vpop.eup %244  ;;  %v165_v17 = vmul.f32 %v159_v8, %v301_v39 }
 0x166   :  { %v160_v10 = vmul.f32 %v245_v9, %v156_v3  ;;  %v168_v16 = vsub.f32 %v162_v15, %v164_v14 }
 0x167   :  { %v169_v18 = vsub.f32 %v161_v12, %v165_v17 }
 0x168   :  { %183 = vperm.xlu1 %229, %v159_v8   ;;  %v166_v38 = vmul.f32 %v160_v10, %v309_v46 }
 0x16a   :  { %v170_v19 = vsub.f32 %v162_v15, %v166_v38 }
 0x16c   :  { %188 = vperm.xlu1 %229, %v160_v10  }
 0x170   :  { %197 = vperm.xlu1 %229, %v167_v13  }
 0x174   :  { %202 = vperm.xlu1 %229, %v168_v16  }
 0x178   :  { %207 = vperm.xlu1 %229, %v169_v18  }
 0x17c   :  { %212 = vperm.xlu1 %229, %v170_v19  }
 0x1df   :  { %v174_v22 = vpop.permute.xlu0 %173 }
 0x1e0   :  { %v191_v45 = vmul.f32 %v174_v22, %v270_v0 }
 0x1e3   :  { %v179_v20 = vpop.permute.xlu1 %178 }
 0x1e4   :  { %v192_v26 = vmul.f32 %v179_v20, %v280_v2 }
 0x1e7   :  { %v184_v21 = vpop.permute.xlu1 %183 }
 0x1e8   :  { %v193_v46 = vmul.f32 %v184_v21, %v275_v1 }
 0x1eb   :  { %v189_v23 = vpop.permute.xlu1 %188 }
 0x1ec   :  { %v194_v0 = vmul.f32 %v189_v23, %v289_v5 }
 0x1ef   :  { %v198_v24 = vpop.permute.xlu1 %197 }
 0x1f0   :  { %v215_v25 = vadd.f32 %v198_v24, %v191_v45 }
 0x1f2   :  { %219 = vst [vmem:[%s358_s3] sm:$0xf] %v215_v25 }
 0x1f3   :  { %v203_v39 = vpop.permute.xlu1 %202 }
 0x1f4   :  { %v216_v27 = vadd.f32 %v203_v39, %v192_v26 }
 0x1f6   :  { %220 = vst [vmem:[%s358_s3 + $0x4] sm:$0xf] %v216_v27 }
 0x1f7   :  { %v208_v28 = vpop.permute.xlu1 %207 }
 0x1f8   :  { %v217_v29 = vadd.f32 %v208_v28, %v193_v46 }
 0x1fa   :  { %221 = vst [vmem:[%s358_s3 + $0x8] sm:$0xf] %v217_v29 }
 0x1fb   :  { %v213_v2 = vpop.permute.xlu1 %212 }
 0x1fc   :  { %v218_v30 = vadd.f32 %v213_v2, %v194_v0 }
 0x1fe   :  { %222 = vst [vmem:[%s358_s3 + $0xc] sm:$0xf] %v218_v30 }

</bundles_post_ra>
